<compile_context>
chip_gen: v7x
topology: tpu7x:2x2x1
jax: 0.10.0
libtpu: 0.0.40
codegen_flags: <defaults>
</compile_context>

<pallas_src>
import functools

import jax
import jax.numpy as jnp
from jax.experimental import pallas as pl
from jax.experimental.pallas import tpu as pltpu

_SUBLANES = 8
_LANES = 128


# --------------------------------------------------------------------------
# helpers
# --------------------------------------------------------------------------
def _round_up(x, m):
    return ((x + m - 1) // m) * m


def _device_kind():
    try:
        return jax.devices()[0].device_kind.lower()
    except Exception:
        return ""


def _budgets(kind):
    """(target logits-tile bytes, vmem_limit_bytes) per TPU generation."""
    if "7" in kind:                      # v7x: 64 MiB VMEM/TC -> keep headroom
        return 6 << 20, 48 << 20
    if "v6" in kind or "v5" in kind:     # 128 MiB VMEM -> big tiles
        return 12 << 20, 96 << 20
    return 8 << 20, 64 << 20             # unknown: conservative


def _compute_dtype(in_dtype, kind):
    # bf16 VPU/EUP exists on v6e/v7x only; keep f32 upcast elsewhere (v5e etc).
    if in_dtype == jnp.bfloat16 and any(s in kind for s in ("v6", "v7", "7x")):
        return jnp.bfloat16
    return jnp.float32


def _alpha_table(alpha, num_classes):
    if alpha is None:
        return None
    if isinstance(alpha, (float, int)):
        vec = [float(alpha), 1.0 - float(alpha)]
    else:
        vec = [float(a) for a in alpha]
    if len(vec) < num_classes:
        raise ValueError(
            f"alpha has {len(vec)} entries but the input has {num_classes} "
            "classes; the PyTorch module would raise on the gather.")
    return jnp.asarray(vec[:num_classes], jnp.float32)


def _apply_focal(logpt, at, gamma):
    """logpt, at: f32 [*, 1] or [1, *] -> per-element focal loss."""
    logpt_w = logpt * at
    g = float(gamma)
    if g == 0.0:
        return -logpt_w
    pt = jnp.exp(logpt)
    base = jnp.maximum(1.0 - pt, 0.0)               # guard tiny negatives
    if g.is_integer() and 1.0 <= g <= 4.0:
        f = base
        for _ in range(int(g) - 1):                 # cheap VPU multiplies
            f = f * base
    else:
        f = jnp.power(base, g)
    return -f * logpt_w


# --------------------------------------------------------------------------
# Kernel A: 2-D path  [rows on sublanes, classes on lanes]
# grid = (cores, inner_tiles)  ->  per-core resident accumulator block
# --------------------------------------------------------------------------
def _focal_rows_kernel(x_ref, lab_ref, at_ref, out_ref, *, gamma, compute_dtype):
    t_idx = pl.program_id(1)

    x = x_ref[...].astype(compute_dtype)            # [T, C]
    labels = lab_ref[...]                           # [T, 1] int32
    at = at_ref[...]                                 # [T, 1] f32 (0 on pad rows)
    tm, c = x.shape

    m = jnp.max(x, axis=1, keepdims=True)           # [T, 1]
    z = x - m
    ez = jnp.exp(z)
    lse = jnp.log(jnp.sum(ez.astype(jnp.float32), axis=1, keepdims=True))

    class_ids = jax.lax.broadcasted_iota(jnp.int32, (tm, c), 1)
    sel = jnp.where(class_ids == labels, z, jnp.zeros_like(z))
    # exactly one non-zero term per row -> accumulation dtype is irrelevant
    z_lab = jnp.sum(sel, axis=1, keepdims=True).astype(jnp.float32)

    logpt = z_lab - lse                              # [T, 1] = log p_t
    loss = _apply_focal(logpt, at, gamma)            # [T, 1]
    partial = jnp.sum(loss, axis=0, keepdims=True)   # [1, 1]

    @pl.when(t_idx == 0)
    def _():
        out_ref[...] = jnp.zeros_like(out_ref)

    out_ref[...] += jnp.broadcast_to(partial, out_ref.shape)


def _pick_tile_rows(n, c, itemsize, target_bytes, max_rows=None):
    n_pad = _round_up(max(n, 1), _SUBLANES)
    rows = target_bytes // max(1, c * itemsize)
    rows = max(_SUBLANES, (int(rows) // _SUBLANES) * _SUBLANES)
    rows = min(rows, n_pad)
    if max_rows is not None:
        rows = min(rows, max(_SUBLANES, (int(max_rows) // _SUBLANES) * _SUBLANES))
    # Guarantee >=2 tiles so the parallel axis can be split across TensorCores.
    if rows >= n_pad and n_pad > _SUBLANES:
        rows = _round_up((n_pad + 1) // 2, _SUBLANES)
    return rows


def _make_row_map(inner):
    def index_map(ci, ti):
        return (ci * inner + ti, 0)
    return index_map


def _focal_loss_2d(x, target, gamma, alpha_tab, size_average, kind, max_tile_rows):
    n, c = x.shape
    tflat = target.reshape(-1).astype(jnp.int32)

    # alpha[target] gathered in the wrapper (4 B/row instead of a [T,C] reduce).
    at = (jnp.ones((n,), jnp.float32) if alpha_tab is None
          else jnp.take(alpha_tab, tflat, axis=0).astype(jnp.float32))

    target_bytes, vmem_limit = _budgets(kind)
    tile_n = _pick_tile_rows(n, c, x.dtype.itemsize, target_bytes, max_tile_rows)

    ncores = 2
    total_tiles = -(-n // tile_n)
    inner = -(-total_tiles // ncores)
    np_rows = ncores * inner * tile_n

    pad = np_rows - n
    if pad:
        x = jnp.pad(x, ((0, pad), (0, 0)))           # finite zeros -> safe exp/log
        tflat = jnp.pad(tflat, (0, pad))
        at = jnp.pad(at, (0, pad))                    # weight 0 -> contributes 0
    lab2 = tflat.reshape(np_rows, 1)
    at2 = at.reshape(np_rows, 1)

    cdt = _compute_dtype(x.dtype, kind)
    kernel = functools.partial(_focal_rows_kernel, gamma=gamma, compute_dtype=cdt)
    row_map = _make_row_map(inner)

    cost = pl.CostEstimate(
        flops=int(8 * np_rows * c),
        transcendentals=int(np_rows * c + 2 * np_rows),
        bytes_accessed=int(np_rows * c * x.dtype.itemsize + 2 * np_rows * 4))

    partials = pl.pallas_call(
        kernel,
        out_shape=jax.ShapeDtypeStruct((ncores * _SUBLANES, _LANES), jnp.float32),
        grid=(ncores, inner),
        in_specs=[
            pl.BlockSpec((tile_n, c), row_map),       # logits tile
            pl.BlockSpec((tile_n, 1), row_map),       # labels
            pl.BlockSpec((tile_n, 1), row_map),       # alpha[target]
        ],
        out_specs=pl.BlockSpec((_SUBLANES, _LANES), lambda ci, ti: (ci, 0)),
        compiler_params=pltpu.CompilerParams(
            dimension_semantics=("parallel", "arbitrary"),
            vmem_limit_bytes=vmem_limit),
        cost_estimate=cost,
    )(x, lab2, at2)

    total = jnp.sum(partials.reshape(ncores, _SUBLANES, _LANES)[:, 0, 0])
    if size_average:
        return total / jnp.float32(n)
    return total


# --------------------------------------------------------------------------
# Kernel B: ndim>2 path, native [N, C, H*W] layout (no XLA transpose)
# grid = (hw_tiles, batch) ; reductions over C (sublane axis), HW lane-dense
# --------------------------------------------------------------------------
def _focal_chan_kernel(x_ref, lab_ref, at_ref, out_ref, *, gamma, compute_dtype):
    b_idx = pl.program_id(1)

    x = x_ref[0].astype(compute_dtype)               # [C, THW]
    labels = lab_ref[0]                              # [1, THW] int32
    at = at_ref[0]                                   # [1, THW] f32 (0 on pad cols)
    c, thw = x.shape

    m = jnp.max(x, axis=0, keepdims=True)            # [1, THW]
    z = x - m
    ez = jnp.exp(z)
    lse = jnp.log(jnp.sum(ez.astype(jnp.float32), axis=0, keepdims=True))

    class_ids = jax.lax.broadcasted_iota(jnp.int32, (c, thw), 0)
    sel = jnp.where(class_ids == labels, z, jnp.zeros_like(z))
    z_lab = jnp.sum(sel, axis=0, keepdims=True).astype(jnp.float32)

    logpt = z_lab - lse                              # [1, THW]
    loss = _apply_focal(logpt, at, gamma)            # [1, THW]
    partial = jnp.sum(loss, axis=1, keepdims=True)   # [1, 1]

    @pl.when(b_idx == 0)
    def _():
        out_ref[...] = jnp.zeros_like(out_ref)

    out_ref[...] += jnp.broadcast_to(partial, out_ref.shape)


def _pick_tile_hw(hw, c, itemsize, target_bytes, max_lanes=None):
    hw_pad = _round_up(max(hw, 1), _LANES)
    lanes = target_bytes // max(1, c * itemsize)
    lanes = max(_LANES, (int(lanes) // _LANES) * _LANES)
    lanes = min(lanes, hw_pad)
    if max_lanes is not None:
        lanes = min(lanes, max(_LANES, (int(max_lanes) // _LANES) * _LANES))
    # Guarantee >=2 spatial tiles for megacore when possible.
    if lanes >= hw_pad and hw_pad > _LANES:
        lanes = _round_up((hw_pad + 1) // 2, _LANES)
    return lanes


def _focal_loss_nd(x, target, gamma, alpha_tab, size_average, kind, max_tile_lanes):
    b, c = x.shape[0], x.shape[1]
    hw = 1
    for d in x.shape[2:]:
        hw *= d
    xr = x.reshape(b, c, hw)                          # contiguous: free reshape
    tflat = target.reshape(b, hw).astype(jnp.int32)

    at = (jnp.ones((b, hw), jnp.float32) if alpha_tab is None
          else jnp.take(alpha_tab, tflat.reshape(-1), axis=0)
               .astype(jnp.float32).reshape(b, hw))

    target_bytes, vmem_limit = _budgets(kind)
    tile_hw = _pick_tile_hw(hw, c, x.dtype.itemsize, target_bytes, max_tile_lanes)
    hw_tiles = -(-hw // tile_hw)
    hwp = hw_tiles * tile_hw

    pad = hwp - hw
    if pad:
        xr = jnp.pad(xr, ((0, 0), (0, 0), (0, pad)))  # finite zeros
        tflat = jnp.pad(tflat, ((0, 0), (0, pad)))
        at = jnp.pad(at, ((0, 0), (0, pad)))          # weight 0 -> contributes 0
    lab3 = tflat.reshape(b, 1, hwp)
    at3 = at.reshape(b, 1, hwp)

    cdt = _compute_dtype(x.dtype, kind)
    kernel = functools.partial(_focal_chan_kernel, gamma=gamma, compute_dtype=cdt)

    cost = pl.CostEstimate(
        flops=int(8 * b * c * hwp),
        transcendentals=int(b * c * hwp + 2 * b * hwp),
        bytes_accessed=int(b * c * hwp * x.dtype.itemsize + 2 * b * hwp * 4))

    partials = pl.pallas_call(
        kernel,
        out_shape=jax.ShapeDtypeStruct((hw_tiles * _SUBLANES, _LANES), jnp.float32),
        grid=(hw_tiles, b),
        in_specs=[
            pl.BlockSpec((1, c, tile_hw), lambda hi, bi: (bi, 0, hi)),  # logits
            pl.BlockSpec((1, 1, tile_hw), lambda hi, bi: (bi, 0, hi)),  # labels
            pl.BlockSpec((1, 1, tile_hw), lambda hi, bi: (bi, 0, hi)),  # alpha[t]
        ],
        out_specs=pl.BlockSpec((_SUBLANES, _LANES), lambda hi, bi: (hi, 0)),
        compiler_params=pltpu.CompilerParams(
            dimension_semantics=("parallel", "arbitrary"),
            vmem_limit_bytes=vmem_limit),
        cost_estimate=cost,
    )(xr, lab3, at3)

    total = jnp.sum(partials.reshape(hw_tiles, _SUBLANES, _LANES)[:, 0, 0])
    if size_average:
        return total / jnp.float32(b * hw)
    return total


# --------------------------------------------------------------------------
# public entry point (matches FocalLoss.forward semantics)
# --------------------------------------------------------------------------
def focal_loss(logits, target, *, gamma=0.0, alpha=None, size_average=True,
               max_tile_rows=None, max_tile_lanes=None):
    kind = _device_kind()
    num_classes = logits.shape[1]
    alpha_tab = _alpha_table(alpha, num_classes)
    if logits.ndim > 2:
        return _focal_loss_nd(logits, target, float(gamma), alpha_tab,
                              size_average, kind, max_tile_lanes)
    return _focal_loss_2d(logits, target, float(gamma), alpha_tab,
                          size_average, kind, max_tile_rows)


# --------------------------------------------------------------------------
# pure-JAX reference (mirrors the PyTorch module)
# --------------------------------------------------------------------------
def _reference(logits, target, *, gamma=0.0, alpha=None, size_average=True):
    x = logits.astype(jnp.float32)
    if x.ndim > 2:
        n0, c0 = x.shape[0], x.shape[1]
        x = x.reshape(n0, c0, -1)
        x = jnp.transpose(x, (0, 2, 1)).reshape(-1, c0)
    t = target.reshape(-1).astype(jnp.int32)
    logp = jax.nn.log_softmax(x, axis=1)
    logpt = jnp.take_along_axis(logp, t[:, None], axis=1)[:, 0]
    pt = jnp.exp(logpt)
    if alpha is not None:
        if isinstance(alpha, (float, int)):
            avec = jnp.asarray([float(alpha), 1.0 - float(alpha)], jnp.float32)
        else:
            avec = jnp.asarray([float(a) for a in alpha], jnp.float32)
        logpt = logpt * avec[t]
    loss = -((1.0 - pt) ** float(gamma)) * logpt
    return loss.mean() if size_average else loss.sum()


if __name__ == "__main__":
    key = jax.random.PRNGKey(0)
    k1, k2, k3, k4, k5, k6, k7, k8 = jax.random.split(key, 8)

    # Case 1: 4-D logits [N, C, H, W] (dim>2 path) -> native-layout kernel,
    # gamma=2, per-class alpha list, mean reduction. 2 spatial tiles x 2 batch.
    x1 = jax.random.normal(k1, (2, 4, 16, 16), jnp.float32)
    t1 = jax.random.randint(k2, (2, 16, 16), 0, 4, jnp.int32)
    a1 = [0.25, 0.75, 0.5, 0.5]
    got1 = jax.block_until_ready(
        focal_loss(x1, t1, gamma=2.0, alpha=a1, size_average=True))
    ref1 = _reference(x1, t1, gamma=2.0, alpha=a1, size_average=True)
    assert jnp.allclose(got1, ref1, rtol=1e-4, atol=1e-5), (got1, ref1)

    # Case 2: 2-D logits, gamma=0, no alpha, sum reduction; small max_tile_rows
    # forces a multi-tile grid, zero-padded tail rows and inner-axis accumulation.
    x2 = jax.random.normal(k3, (1000, 16), jnp.float32)
    t2 = jax.random.randint(k4, (1000,), 0, 16, jnp.int32)
    got2 = jax.block_until_ready(
        focal_loss(x2, t2, gamma=0.0, alpha=None, size_average=False,
                   max_tile_rows=256))
    ref2 = _reference(x2, t2, gamma=0.0, alpha=None, size_average=False)
    assert jnp.allclose(got2, ref2, rtol=1e-4, atol=1e-3), (got2, ref2)

    # Case 3: bf16 logits (kept in bf16 through subtract/exp on v6e/v7x),
    # gamma=2, mean reduction.
    x3 = jax.random.normal(k5, (512, 128), jnp.float32).astype(jnp.bfloat16)
    t3 = jax.random.randint(k6, (512,), 0, 128, jnp.int32)
    got3 = jax.block_until_ready(
        focal_loss(x3, t3, gamma=2.0, alpha=None, size_average=True))
    ref3 = _reference(x3, t3, gamma=2.0, alpha=None, size_average=True)
    assert jnp.allclose(got3, ref3, rtol=5e-2, atol=5e-3), (got3, ref3)

    # Case 4: binary classification with scalar alpha (alpha -> [a, 1-a]), gamma=1.
    x4 = jax.random.normal(k7, (256, 2), jnp.float32)
    t4 = jax.random.randint(k8, (256,), 0, 2, jnp.int32)
    got4 = jax.block_until_ready(
        focal_loss(x4, t4, gamma=1.0, alpha=0.25, size_average=True))
    ref4 = _reference(x4, t4, gamma=1.0, alpha=0.25, size_average=True)
    assert jnp.allclose(got4, ref4, rtol=1e-4, atol=1e-5), (got4, ref4)

    print("KERNEL_OK")
</pallas_src>

<mosaic_0001>
module attributes {stable_mosaic.version = 11 : i64} {
  func.func @_focal_chan_kernel(%arg0: i32, %arg1: i32, %arg2: memref<1x4x128xf32, #tpu.memory_space<vmem>>, %arg3: memref<1x1x128xi32, #tpu.memory_space<vmem>>, %arg4: memref<1x1x128xf32, #tpu.memory_space<vmem>>, %arg5: memref<8x128xf32, #tpu.memory_space<vmem>>) attributes {dimension_semantics = [#tpu.dimension_semantics<parallel>, #tpu.dimension_semantics<arbitrary>], iteration_bounds = array<i64: 2, 2>, scalar_prefetch = 0 : i64, scratch_operands = 0 : i64, tpu.core_type = #tpu.core_type<tc>, window_params = [{transform_indices = @transform_0, window_bounds = array<i64: 1, 4, 128>}, {transform_indices = @transform_1, window_bounds = array<i64: 1, 1, 128>}, {transform_indices = @transform_2, window_bounds = array<i64: 1, 1, 128>}, {transform_indices = @transform_3, window_bounds = array<i64: 8, 128>}]} {
    %c0 = arith.constant 0 : index
    %c0_0 = arith.constant 0 : index
    %c0_1 = arith.constant 0 : index
    %0 = vector.load %arg2[%c0, %c0_0, %c0_1] : memref<1x4x128xf32, #tpu.memory_space<vmem>>, vector<1x4x128xf32>
    %1 = vector.shape_cast %0 : vector<1x4x128xf32> to vector<4x128xf32>
    %c0_2 = arith.constant 0 : index
    %c0_3 = arith.constant 0 : index
    %c0_4 = arith.constant 0 : index
    %2 = vector.load %arg3[%c0_2, %c0_3, %c0_4] : memref<1x1x128xi32, #tpu.memory_space<vmem>>, vector<1x1x128xi32>
    %3 = vector.shape_cast %2 : vector<1x1x128xi32> to vector<1x128xi32>
    %c0_5 = arith.constant 0 : index
    %c0_6 = arith.constant 0 : index
    %c0_7 = arith.constant 0 : index
    %4 = vector.load %arg4[%c0_5, %c0_6, %c0_7] : memref<1x1x128xf32, #tpu.memory_space<vmem>>, vector<1x1x128xf32>
    %5 = vector.shape_cast %4 : vector<1x1x128xf32> to vector<1x128xf32>
    %cst = arith.constant dense<0xFF800000> : vector<128xf32>
    %6 = vector.multi_reduction <maximumf>, %1, %cst [0] : vector<4x128xf32> to vector<128xf32>
    %7 = vector.shape_cast %6 : vector<128xf32> to vector<1x128xf32>
    %8 = vector.broadcast %7 : vector<1x128xf32> to vector<4x128xf32>
    %9 = arith.subf %1, %8 : vector<4x128xf32>
    %10 = math.exp %9 : vector<4x128xf32>
    %cst_8 = arith.constant dense<0.000000e+00> : vector<128xf32>
    %11 = vector.multi_reduction <add>, %10, %cst_8 [0] : vector<4x128xf32> to vector<128xf32>
    %12 = vector.shape_cast %11 : vector<128xf32> to vector<1x128xf32>
    %13 = math.log %12 : vector<1x128xf32>
    %14 = tpu.iota {dimensions = array<i32: 0>} : vector<4x128xi32>
    %15 = vector.broadcast %3 : vector<1x128xi32> to vector<4x128xi32>
    %16 = arith.cmpi eq, %14, %15 : vector<4x128xi32>
    %cst_9 = arith.constant 0.000000e+00 : f32
    %17 = vector.broadcast %cst_9 : f32 to vector<4x128xf32>
    %18 = arith.select %16, %9, %17 : vector<4x128xi1>, vector<4x128xf32>
    %cst_10 = arith.constant dense<0.000000e+00> : vector<128xf32>
    %19 = vector.multi_reduction <add>, %18, %cst_10 [0] : vector<4x128xf32> to vector<128xf32>
    %20 = vector.shape_cast %19 : vector<128xf32> to vector<1x128xf32>
    %21 = arith.subf %20, %13 : vector<1x128xf32>
    %22 = arith.mulf %21, %5 : vector<1x128xf32>
    %23 = math.exp %21 : vector<1x128xf32>
    %cst_11 = arith.constant 1.000000e+00 : f32
    %24 = vector.broadcast %cst_11 : f32 to vector<1x128xf32>
    %25 = arith.subf %24, %23 : vector<1x128xf32>
    %cst_12 = arith.constant 0.000000e+00 : f32
    %26 = vector.broadcast %cst_12 : f32 to vector<1x128xf32>
    %27 = arith.maximumf %25, %26 : vector<1x128xf32>
    %28 = arith.mulf %27, %27 : vector<1x128xf32>
    %cst_13 = arith.constant 0.000000e+00 : f32
    %29 = vector.broadcast %cst_13 : f32 to vector<1x128xf32>
    %30 = arith.subf %29, %28 : vector<1x128xf32>
    %31 = arith.mulf %30, %22 : vector<1x128xf32>
    %cst_14 = arith.constant dense<0.000000e+00> : vector<1xf32>
    %32 = vector.multi_reduction <add>, %31, %cst_14 [1] : vector<1x128xf32> to vector<1xf32>
    %33 = vector.shape_cast %32 : vector<1xf32> to vector<1x1xf32>
    %c0_i32 = arith.constant 0 : i32
    %34 = arith.cmpi eq, %arg1, %c0_i32 : i32
    %35 = arith.extui %34 : i1 to i32
    %c0_i32_15 = arith.constant 0 : i32
    %36 = arith.cmpi ne, %35, %c0_i32_15 : i32
    scf.if %36 {
      %cst_20 = arith.constant 0.000000e+00 : f32
      %42 = vector.broadcast %cst_20 : f32 to vector<8x128xf32>
      %c0_21 = arith.constant 0 : index
      %c0_22 = arith.constant 0 : index
      %43 = vector.load %arg5[%c0_21, %c0_22] : memref<8x128xf32, #tpu.memory_space<vmem>>, vector<8x128xf32>
      tpu.vector_store %arg5[%c0_21, %c0_22], %42 {strides = array<i32>} : memref<8x128xf32, #tpu.memory_space<vmem>>, vector<8x128xf32>,
    } else {
    }
    %c0_16 = arith.constant 0 : index
    %c0_17 = arith.constant 0 : index
    %37 = vector.load %arg5[%c0_16, %c0_17] : memref<8x128xf32, #tpu.memory_space<vmem>>, vector<8x128xf32>
    %38 = vector.shape_cast %33 : vector<1x1xf32> to vector<1x1xf32>
    %39 = vector.broadcast %38 : vector<1x1xf32> to vector<8x128xf32>
    %40 = arith.addf %37, %39 : vector<8x128xf32>
    %c0_18 = arith.constant 0 : index
    %c0_19 = arith.constant 0 : index
    %41 = vector.load %arg5[%c0_18, %c0_19] : memref<8x128xf32, #tpu.memory_space<vmem>>, vector<8x128xf32>
    tpu.vector_store %arg5[%c0_18, %c0_19], %40 {strides = array<i32>} : memref<8x128xf32, #tpu.memory_space<vmem>>, vector<8x128xf32>,
    return
  }
  func.func @transform_0(%arg0: i32, %arg1: i32) -> (i32, i32, i32) {
    %c0_i32 = arith.constant 0 : i32
    %c0_i32_0 = arith.constant 0 : i32
    return %arg1, %c0_i32, %arg0 : i32, i32, i32
  }
  func.func @transform_1(%arg0: i32, %arg1: i32) -> (i32, i32, i32) {
    %c0_i32 = arith.constant 0 : i32
    %c0_i32_0 = arith.constant 0 : i32
    return %arg1, %c0_i32, %arg0 : i32, i32, i32
  }
  func.func @transform_2(%arg0: i32, %arg1: i32) -> (i32, i32, i32) {
    %c0_i32 = arith.constant 0 : i32
    %c0_i32_0 = arith.constant 0 : i32
    return %arg1, %c0_i32, %arg0 : i32, i32, i32
  }
  func.func @transform_3(%arg0: i32, %arg1: i32) -> (i32, i32) {
    %c0_i32 = arith.constant 0 : i32
    %c0_i32_0 = arith.constant 0 : i32
    return %arg0, %c0_i32 : i32, i32
  }
}

</mosaic_0001>

<bundles_post_ra>
// kernel: tpu_custom_call.1
= control target key start
LH: loop header
LB: loop body
LE: loop exit
PB: predicated region body
PF: predicated region fallthrough
CT: control target
= control target key end

     0   :  { %s1174_s0 = inlined_call_operand.hbm [shape: f32[2,4,256], index: 0, kind: input, shape index: {}]   ;;  %s1175_s1 = inlined_call_operand.hbm [shape: s32[2,1,256], index: 1, kind: input, shape index: {}]   ;;  %s1176_s2 = inlined_call_operand.hbm [shape: f32[2,1,256], index: 2, kind: input, shape index: {}]   ;;  %s1177_s3 = inlined_call_operand.hbm [shape: f32[16,128], index: 3, kind: output, shape index: {}]  }
   0x1   :  { %1188 = sst [smem:[#allocation21_spill]] %s1175_s1 }
   0x2   :  { %8 = vsyncpa [#allocation3], 0 }
   0x3   :  { %10 = vsyncpa [#allocation3 + $0x1], 0 }
   0x4   :  { %11 = vsyncpa [#allocation6], 0 }
   0x5   :  { %13 = vsyncpa [#allocation6 + $0x1], 0 }
   0x6   :  { %14 = vsyncpa [#allocation4], 0 }
   0x7   :  { %16 = vsyncpa [#allocation4 + $0x1], 0  ;;  %s858_s12 = smov 0   ;;  %s860_s13 = smov 0  }
   0x8   :  { %s862_s14 = smov 0   ;;  %s864_s15 = smov 0  }
   0x9   :  { %s866_s16 = smov 0   ;;  %s868_s17 = smov 0  }
   0xa   :  { %s870_s18 = smov 0   ;;  %s872_s19 = smov 0  }
   0xb   :  { %s874_s20 = smov 0   ;;  %s876_s21 = smov 0  }
   0xc   :  { %s878_s22 = smov 0  }
   0xd LB: > { %1189 = sst [smem:[#allocation12_spill]] %s799_s14  ;;  %s912_s23 = sadd.s32 4294967295, %s831_s22   ;;  %s831_s22 = sphi %s878_s22, %s22_s22   ;;  %s827_s21 = sphi %s876_s21, %s1219_s21   ;;  %s823_s20 = sphi %s874_s20, %s1218_s20   ;;  %s819_s19 = sphi %s872_s19, %s1217_s19   ;;  %s815_s18 = sphi %s870_s18, %s1216_s18   ;;  %s811_s17 = sphi %s868_s17, %s1224_s17   ;;  %s807_s16 = sphi %s866_s16, %s1223_s16   ;;  %s803_s15 = sphi %s864_s15, %s1222_s15   ;;  %s799_s14 = sphi %s862_s14, %s1213_s14   ;;  %s795_s13 = sphi %s860_s13, %s1221_s13   ;;  %s791_s12 = sphi %s858_s12, %s1220_s12  }
   0xe   : > { %1190 = sst [smem:[#allocation13_spill]] %s811_s17  ;;  %s477_s24 = sadd.s32 4294967294, %s831_s22  }
   0xf   : > { %1191 = sst [smem:[#allocation14_spill]] %s823_s20  ;;  %s31_s25 = sadd.s32 1, %s823_s20 }
  0x10   : > { %1192 = sst [smem:[#allocation15_spill]] %s827_s21  ;;  %s34_s26 = sadd.s32 1, %s827_s21 }
  0x11   : > { %p32_p0 = scmp.ge.s32.totalorder %s31_s25, 2  ;;  %s43_s27 = sadd.s32 1, %s811_s17 }
  0x12   : > { %p50_p1 = scmp.ne.s32.totalorder %s811_s17, %s807_s16  ;;  %p51_p2 = scmp.eq.s32.totalorder %s831_s22, 0 }
  0x13   : > { %s1226_s25 = smov (%p32_p0, %s31_s25), 0  ;;  %s1228_s26 = smov (!%p32_p0, %s34_s26), %s827_s21 }
  0x14   : > { %1193 = sst [smem:[#allocation16_spill]] %s1226_s25  ;;  %s38_s28 = ssub.s32 %s823_s20, %s1226_s25 }
  0x15   : > { %p926_p3 = por %p51_p2, %p50_p1  ;;  %p36_p4 = scmp.ge.s32.totalorder %s1228_s26, 2 }
  0x16   : > { %p56_p5 = scmp.ne.s32.totalorder %s807_s16, %s803_s15  ;;  %p57_p6 = scmp.eq.s32.totalorder %s912_s23, 0 }
  0x17   : > { %s125_s30 = sadd.s32 1, %s799_s14  ;;  %s1230_s26 = smov (%p36_p4, %s1228_s26), 0 }
  0x18   : > { %1195 = sst [smem:[#allocation17_spill]] %s1230_s26  ;;  %p935_p7 = por %p57_p6, %p56_p5 }
  0x19   : > { %p135_p8 = scmp.ne.s32.totalorder %s799_s14, %s795_s13  ;;  %s39_s5 = ssub.s32 %s827_s21, %s1230_s26 }
  0x1a   : > { %s1196_s4 = scalar_select %p935_p7, 1, 0 }
  0x1b   : > { %p136_p9 = scmp.eq.s32.totalorder %s912_s23, 3  ;;  %s40_s6 = sor.u32 %s39_s5, %s38_s28 }
  0x1c   : > { %p123_p10 = scmp.eq.s32.totalorder %s39_s5, 0  ;;  %p41_p11 = scmp.eq.s32.totalorder %s40_s6, 0 }
  0x1d   : > { %p944_p12 = por %p136_p9, %p135_p8  ;;  %p141_p13 = scmp.ne.s32.totalorder %s795_s13, %s791_s12 }
  0x1e   : > { %s949_s8 = scalar_select %p123_p10, %s799_s14, %s125_s30  }
  0x1f   : > { %s1197_s7 = scalar_select %p944_p12, 1, 0 }
  0x20   : > { %1198 = sst [smem:[#allocation18_spill]] %s949_s8  ;;  %p142_p0 = scmp.eq.s32.totalorder %s477_s24, 3 }
  0x21   : > { %s952_s9 = scalar_select %p41_p11, %s811_s17, %s43_s27  }
  0x22   : > { %p518_p1 = scmp.lt.s32.totalorder %s831_s22, 4  ;;  %p957_p2 = por %p142_p0, %p141_p13 }
  0x23   : > { %1199 = sst [smem:[#allocation19_spill]] %s952_s9  ;;  %s962_s11 = sand.u32 1, %s811_s17  }
  0x24   : > { %s1200_s10 = scalar_select %p957_p2, 1, 0 }
  0x25   : > { %s481_s15 = sshll.u32 %s823_s20, 1  ;;  %p967_p4 = pnand %p518_p1, %p926_p3 }
  0x26   : > { %1201 = sst [smem:[#allocation20_spill]] %s1200_s10  ;;  %s972_s30 = sadd.s32 %s827_s21, %s481_s15 }
  0x27   : > { %s1202_s28 = scalar_select %p967_p4, 1, 0 }
  0x28   : > { %s182_s27 = sand.u32 1, %s831_s22   ;;  %s484_s24 = sshll.u32 %s972_s30, 4 }
  0x29   : > { %s1203_s1 = sld [smem:[#allocation21_spill]]  ;;  %s185_s29 = scalar_lea.vmem [#allocation5], %s962_s11 }
  0x2a   : > { %s194_s25 = sshll.u32 %s185_s29, 4  ;;  %s987_s15 = scalar_lea.hbm %s1176_s2, %s484_s24  ;;  %s982_s25 = int_to_ptr.vmem [resolvable:$true] %s194_s25 }
  0x2b   : > { %s989_s21 = scalar_lea.sflag [#allocation6], %s182_s27  ;;  %p995_p5 = pneg %p967_p4 }
  0x2f   : > { %s979_s26 = scalar_lea.hbm %s1203_s1, %s484_s24  ;;  %s620_s8 = scalar_lea.hbm %s1203_s1, 64 }
  0x30   : > { %s615_s17 = scalar_lea.hbm %s979_s26, 16  ;;  %p621_p9 = scmp.lt.u32.totalorder %s979_s26, %s1203_s1 }
  0x31   : > { %p616_p3 = scmp.ne.s32.totalorder %s979_s26, %s615_s17  ;;  %p622_p10 = scmp.lt.u32.totalorder %s620_s8, %s615_s17 }
  0x32   : > { %p624_p13 = scmp.lt.u32.totalorder %s615_s17, %s979_s26 }
  0x33   : > { %p618_p6 = pnand %p995_p5, %p616_p3  ;;  %p623_p11 = por %p622_p10, %p621_p9 }
  0x35   : > { %p619_p8 = pneg %p618_p6  ;;  %p625_p0 = por %p624_p13, %p623_p11 }
  0x37   : > { %p626_p1 = pnand %p625_p0, %p619_p8 }
  0x39   : > { %629 = shalt.err (!%p626_p1)
}
  0x3a   : > { %s630_s27 = scalar_lea.vmem %s982_s25, 16  ;;  %s833_s24 = smov [#allocation5]  }
  0x3b   : > { %p631_p3 = scmp.ne.s32.totalorder %s982_s25, %s630_s27  ;;  %s635_s6 = sshll.u32 %s833_s24, 4  ;;  %s636_s6 = int_to_ptr.vmem [resolvable:$false] %s635_s6 }
  0x3c   : > { %s637_s29 = scalar_lea.vmem %s636_s6, 32  ;;  %p638_p12 = scmp.lt.s32.totalorder %s982_s25, %s636_s6 }
  0x3d   : > { %p633_p6 = pnand %p631_p3, %p995_p5  ;;  %p639_p7 = scmp.lt.s32.totalorder %s637_s29, %s630_s27 }
  0x3f   : > { %p634_p2 = pneg %p633_p6  ;;  %p640_p9 = por %p639_p7, %p638_p12 }
  0x41   : > { %p641_p10 = pnand %p640_p9, %p634_p2 }
  0x43   : > { %644 = shalt.err (!%p641_p10)
}
  0x44   : > { %510 = dma.hbm_to_vmem [thread:$0]  (!%p967_p4), %s979_s26, 16, %s982_s25, %s989_s21  }
  0x45   : > { %p487_p8 = scmp.ge.s32.totalorder %s831_s22, 1  ;;  %p218_p11 = scmp.lt.s32.totalorder %s831_s22, 5 }
  0x46   : > { %s480_s8 = sshll.u32 %s962_s11, 2  ;;  %s482_s20 = sshll.u32 %s972_s30, 6 }
  0x47   : > { %p1021_p13 = pnand %p487_p8, %p218_p11  ;;  %s1030_s24 = scalar_lea.hbm %s1174_s0, %s482_s20 }
  0x48   : > { %s166_s6 = scalar_lea.vmem [#allocation2], %s480_s8  ;;  %s204_s25 = scalar_lea.vmem [#allocation7], %s962_s11 }
  0x49   : > { %s1205_s17 = scalar_select %p1021_p13, 1, 0 }
  0x4a   : > { %s175_s29 = sshll.u32 %s166_s6, 4  ;;  %s1035_s26 = sshll.u32 %s204_s25, 4  ;;  %s1032_s29 = int_to_ptr.vmem [resolvable:$true] %s175_s29  ;;  %s214_s26 = int_to_ptr.vmem [resolvable:$true] %s1035_s26 }
  0x4b   : > { %s163_s1 = scalar_lea.sflag [#allocation3], %s962_s11  ;;  %s645_s14 = scalar_lea.hbm %s1030_s24, 64 }
  0x4c   : > { %p646_p7 = scmp.ne.s32.totalorder %s1030_s24, %s645_s14  ;;  %s650_s9 = scalar_lea.hbm %s1174_s0, 256 }
  0x4d   : > { %p651_p0 = scmp.lt.u32.totalorder %s1030_s24, %s1174_s0  ;;  %p652_p1 = scmp.lt.u32.totalorder %s650_s9, %s645_s14 }
  0x4e   : > { %p648_p12 = pnand %p646_p7, %p995_p5  ;;  %p654_p6 = scmp.lt.u32.totalorder %s645_s14, %s1030_s24 }
  0x4f   : > { %p653_p3 = por %p652_p1, %p651_p0 }
  0x50   : > { %p649_p2 = pneg %p648_p12 }
  0x51   : > { %p655_p9 = por %p654_p6, %p653_p3 }
  0x53   : > { %p656_p10 = pnand %p655_p9, %p649_p2 }
  0x55   : > { %659 = shalt.err (!%p656_p10)
}
  0x56   : > { %s660_s11 = scalar_lea.vmem %s1032_s29, 64  ;;  %s834_s8 = smov [#allocation2]  }
  0x57   : > { %p661_p8 = scmp.ne.s32.totalorder %s1032_s29, %s660_s11  ;;  %s665_s6 = sshll.u32 %s834_s8, 4  ;;  %s666_s6 = int_to_ptr.vmem [resolvable:$false] %s665_s6 }
  0x58   : > { %s667_s10 = scalar_lea.vmem %s666_s6, 128  ;;  %p668_p12 = scmp.lt.s32.totalorder %s1032_s29, %s666_s6 }
  0x59   : > { %p663_p11 = pnand %p661_p8, %p995_p5  ;;  %p669_p13 = scmp.lt.s32.totalorder %s667_s10, %s660_s11 }
  0x5b   : > { %p664_p7 = pneg %p663_p11  ;;  %p670_p0 = por %p669_p13, %p668_p12 }
  0x5d   : > { %p671_p1 = pnand %p670_p0, %p664_p7 }
  0x5f   : > { %674 = shalt.err (!%p671_p1)
}
  0x60   : > { %507 = dma.hbm_to_vmem [thread:$0]  (!%p967_p4), %s1030_s24, 64, %s1032_s29, %s163_s1  }
  0x61   : > { %s675_s14 = scalar_lea.hbm %s987_s15, 16  ;;  %s680_s20 = scalar_lea.hbm %s1176_s2, 64 }
  0x62   : > { %p676_p2 = scmp.ne.s32.totalorder %s987_s15, %s675_s14  ;;  %p681_p13 = scmp.lt.u32.totalorder %s987_s15, %s1176_s2 }
  0x63   : > { %p682_p9 = scmp.lt.u32.totalorder %s680_s20, %s675_s14  ;;  %p684_p8 = scmp.lt.u32.totalorder %s675_s14, %s987_s15 }
  0x64   : > { %p678_p3 = pnand %p676_p2, %p995_p5 }
  0x65   : > { %p683_p10 = por %p682_p9, %p681_p13 }
  0x66   : > { %p679_p6 = pneg %p678_p3 }
  0x67   : > { %p685_p11 = por %p684_p8, %p683_p10 }
  0x69   : > { %p686_p7 = pnand %p685_p11, %p679_p6 }
  0x6b   : > { %689 = shalt.err (!%p686_p7)
}
  0x6c   : > { %s690_s1 = scalar_lea.vmem %s214_s26, 16  ;;  %s835_s24 = smov [#allocation7]  }
  0x6d   : > { %p691_p12 = scmp.ne.s32.totalorder %s214_s26, %s690_s1  ;;  %s695_s29 = sshll.u32 %s835_s24, 4  ;;  %s696_s29 = int_to_ptr.vmem [resolvable:$false] %s695_s29 }
  0x6e   : > { %s697_s11 = scalar_lea.vmem %s696_s29, 32  ;;  %p698_p2 = scmp.lt.s32.totalorder %s214_s26, %s696_s29 }
  0x6f   : > { %p693_p0 = pnand %p691_p12, %p995_p5  ;;  %p699_p3 = scmp.lt.s32.totalorder %s697_s11, %s690_s1 }
  0x71   : > { %p694_p1 = pneg %p693_p0  ;;  %p700_p4 = por %p699_p3, %p698_p2 }
  0x73   : > { %p701_p9 = pnand %p700_p4, %p694_p1 }
  0x75   : > { %704 = shalt.err (!%p701_p9)
}
  0x76   : > { %p1206_p13 = scmp.ne.s32.totalorder %s1202_s28, 0  ;;  %p1207_p6 = scmp.ne.s32.totalorder %s1205_s17, 0 }
  0x77   : > { %s1081_s5 = sand.u32 (!%p1207_p6), 1, %s807_s16   ;;  %p1208_p5 = scmp.ne.s32.totalorder (!%p1207_p6), %s1196_s4, 0 }
  0x78   : > { %513 = dma.hbm_to_vmem [thread:$0]  (!%p1206_p13), %s987_s15, 16, %s214_s26, %s989_s21  }
  0x79   : > { %222 = sbr.rel (%p1207_p6) target bundleno = 380 (0x17c), region = 32  ;;  %s488_s8 = sshll.u32 (!%p1207_p6), %s1081_s5, 2 }
  0x7a   : > { %s225_s6 = scalar_lea.sflag (!%p1207_p6), [#allocation3], %s1081_s5  ;;  %s228_s10 = scalar_lea.vmem (!%p1207_p6), [#allocation2], %s488_s8 }
  0x80   : > { %778 = dma.done.wait (%p1208_p5), %s225_s6, 64  }
  0x81   : > { %780 = vsyncadd (%p1208_p5), %s225_s6, 4294967232  ;;  %s233_s21 = sand.u32 1, %s912_s23   ;;  %s236_s15 = scalar_lea.vmem [#allocation5], %s1081_s5 }
  0x82   : > { %s234_s28 = scalar_lea.sflag [#allocation6], %s233_s21 }
  0x83   : > { %782 = dma.done.wait (%p1208_p5), %s234_s28, 32  }
  0x84   : > { %784 = vsyncadd (%p1208_p5), %s234_s28, 4294967264  ;;  %s272_s17 = sand.u32 1, %s795_s13   ;;  %vm278_vm0 = vcmask 1043456   ;;  %v275_v0 = vld [vmem:[%s228_s10] sm:$0xf]  ;;  %v298_v9 = vlaneseq  ;;  %s244_s23 = scalar_lea.vmem [#allocation7], %s1081_s5 }
  0x85   : > { %s1098_s26 = sshll.u32 %s272_s17, 3  ;;  %v279_v1 = vsel %vm278_vm0, %v275_v0, -inf  ;;  %v490_v12 = vld [vmem:[%s236_s15] ss:$0 sm:$0xff]  ;;  %vm322_vm2 = vcmask 1040384   ;;  %p491_p4 = scmp.ne.s32.totalorder %s815_s18, 0 }
  0x86   : > { %v280_v2 = vrot.slane %v279_v1, 4  ;;  %v299_v11 = vshrl.u32 %v298_v9, 7  ;;  %v277_v35 = vld [vmem:[%s244_s23] sm:$0x1]  ;;  %s274_s4 = scalar_lea.vmem [#allocation8], %s1098_s26  ;;  %v836_v43 = vmov (!%p491_p4), 0.0  }
  0x87   : > { %330 = vst [vmem:[%s274_s4] sm:$0xff] (!%p491_p4), %v836_v43 }
  0x88   : > { %v281_v3 = vmax.f32 %v279_v1, %v280_v2  ;;  %vm304_vm1 = vcmp.eq.s32.totalorder %v299_v11, %v490_v12 }
  0x8a   : > { %v282_v4 = vrot.slane %v281_v3, 2 }
  0x8c   : > { %v283_v5 = vmax.f32 %v281_v3, %v282_v4 }
  0x8e   : > { %v284_v6 = vrot.slane %v283_v5, 1 }
  0x90   : > { %v285_v7 = vmax.f32 %v283_v5, %v284_v6 }
  0x92   : > { %v286_v8 = vsub.f32 %v275_v0, %v285_v7 }
  0x94   : > { %v287_v10 = vmul.f32 1.442695, %v286_v8  ;;  %v305_v13 = vsel %vm304_vm1, %v286_v8, 0.0 }
  0x95   : > { %v306_v15 = vsel %vm278_vm0, %v305_v13, 0.0 }
  0x96   : > { %609 = vpow2.f32 %v287_v10  ;;  %v307_v18 = vrot.slane %v306_v15, 4 }
  0x98   : > { %v308_v21 = vadd.f32 %v307_v18, %v306_v15 }
  0x9a   : > { %v309_v24 = vrot.slane %v308_v21, 2 }
  0x9c   : > { %v310_v26 = vadd.f32 %v309_v24, %v308_v21 }
  0x9e   : > { %v311_v27 = vrot.slane %v310_v26, 1 }
  0xa0   : > { %v610_v14 = vpop.eup %609  ;;  %v312_v28 = vadd.f32 %v311_v27, %v310_v26 }
  0xa1   : > { %v289_v16 = vsel %vm278_vm0, %v610_v14, 0.0 }
  0xa2   : > { %v290_v17 = vrot.slane %v289_v16, 4 }
  0xa4   : > { %v291_v19 = vadd.f32 %v290_v17, %v289_v16 }
  0xa6   : > { %v292_v20 = vrot.slane %v291_v19, 2 }
  0xa8   : > { %v293_v22 = vadd.f32 %v292_v20, %v291_v19 }
  0xaa   : > { %v294_v23 = vrot.slane %v293_v22, 1 }
  0xac   : > { %v295_v25 = vadd.f32 %v294_v23, %v293_v22 }
  0xae   : > { %611 = vlog2.f32 %v295_v25 }
  0xb8   : > { %v612_v29 = vpop.eup %611 }
  0xb9   : > { %v297_v30 = vmul.f32 0.6931472, %v612_v29 }
  0xbb   : > { %v313_v31 = vsub.f32 %v312_v28, %v297_v30 }
  0xbd   : > { %v315_v32 = vmul.f32 1.442695, %v313_v31  ;;  %v314_v37 = vmul.f32 %v313_v31, %v277_v35 }
  0xbf   : > { %613 = vpow2.f32 %v315_v32 }
  0xc9   : > { %v614_v33 = vpop.eup %613 }
  0xca   : > { %v317_v34 = vsub.f32 1.0, %v614_v33 }
  0xcc   : > { %v318_v36 = vmax.f32 %v317_v34, 0.0 }
  0xce   : > { %v319_v38 = vmul.f32 %v318_v36, %v318_v36 }
  0xd0   : > { %v320_v39 = vsub.f32 0.0, %v319_v38 }
  0xd2   : > { %v321_v40 = vmul.f32 %v320_v39, %v314_v37 }
  0xd4   : > { %v323_v41 = vsel %vm322_vm2, %v321_v40, 0.0 }
  0xd5   : > { %324 = vadd.xlane.f32.xlu0 %v323_v41 }
 0x15c   : > { %329 = sbr.rel (%p491_p4) target bundleno = 355 (0x163), region = 48 }
 0x162   : > { %v325_v42 = vpop.xlane.xlu0 %324 }
 0x163 PF: > { %v334_v44 = vsub.s32 0, %v299_v11  ;;  %v331_v45 = vld [vmem:[%s274_s4] sm:$0xff]  ;;  %s493_s14 = sshll.u32 %s819_s19, 7  ;;  %s352_s25 = sshll.u32 %s274_s4, 4  ;;  %s1112_s25 = int_to_ptr.vmem [resolvable:$true] %s352_s25 }
 0x164   : > { %s1110_s9 = scalar_lea.hbm %s1177_s3, %s493_s14  ;;  %s339_s18 = scalar_lea.sflag [#allocation4], %s272_s17 }
 0x165   : > { %v335_v46 = vrot.slane %v325_v42, %v334_v44  ;;  %s705_s27 = scalar_lea.vmem %s1112_s25, 128  ;;  %p1209_p8 = scmp.ne.s32.totalorder %s1197_s7, 0 }
 0x166   : > { %p706_p10 = scmp.ne.s32.totalorder %s1112_s25, %s705_s27  ;;  %s837_s19 = smov [#allocation8]  }
 0x167   : > { %v336_v47 = vadd.f32 %v335_v46, %v331_v45  ;;  %s709_s1 = sshll.u32 %s837_s19, 4  ;;  %s710_s1 = int_to_ptr.vmem [resolvable:$false] %s709_s1 }
 0x168   : > { %p707_p11 = pnand %p706_p10, %p1209_p8  ;;  %s711_s24 = scalar_lea.vmem %s710_s1, 256 }
 0x169   : > { %337 = vst [vmem:[%s274_s4] sm:$0xff] %v336_v47  ;;  %p712_p12 = scmp.lt.s32.totalorder %s1112_s25, %s710_s1  ;;  %p713_p0 = scmp.lt.s32.totalorder %s711_s24, %s705_s27 }
 0x16a   : > { %p708_p7 = pneg %p707_p11 }
 0x16b   : > { %p714_p1 = por %p713_p0, %p712_p12 }
 0x16d   : > { %p715_p2 = pnand %p714_p1, %p708_p7 }
 0x16f   : > { %718 = shalt.err (!%p715_p2)
}
 0x170   : > { %s719_s29 = scalar_lea.hbm %s1110_s9, 128  ;;  %s723_s8 = scalar_lea.hbm %s1177_s3, 256 }
 0x171   : > { %p720_p3 = scmp.ne.s32.totalorder %s1110_s9, %s719_s29  ;;  %p724_p6 = scmp.lt.u32.totalorder %s1110_s9, %s1177_s3 }
 0x172   : > { %p725_p5 = scmp.lt.u32.totalorder %s723_s8, %s719_s29  ;;  %p727_p10 = scmp.lt.u32.totalorder %s719_s29, %s1110_s9 }
 0x173   : > { %p721_p9 = pnand %p720_p3, %p1209_p8 }
 0x174   : > { %p726_p4 = por %p725_p5, %p724_p6 }
 0x175   : > { %p722_p13 = pneg %p721_p9 }
 0x176   : > { %p728_p11 = por %p727_p10, %p726_p4 }
 0x178   : > { %p729_p7 = pnand %p728_p11, %p722_p13 }
 0x17a   : > { %732 = shalt.err (!%p729_p7)
}
 0x17b   : > { %502 = dma.vmem_to_hbm [thread:$0]  (%p1209_p8), %s1112_s25, 128, %s1110_s9, %s339_s18  }
 0x17c PF: > { %s1210_s21 = sld [smem:[#allocation20_spill]]  ;;  %p519_p12 = scmp.ge.s32.totalorder %s831_s22, 2 }
 0x17d   : > { %s364_s28 = sand.u32 1, %s791_s12  }
 0x17e   : > { %s365_s15 = scalar_lea.sflag [#allocation4], %s364_s28 }
 0x182   : > { %p1211_p0 = scmp.ne.s32.totalorder %s1210_s21, 0 }
 0x184   : > { %p515_p1 = pnand %p519_p12, %p1211_p0 }
 0x186   : > { %786 = dma.done.wait (!%p515_p1), %s365_s15, 128  }
 0x187   : > { %788 = vsyncadd (!%p515_p1), %s365_s15, 4294967168  ;;  %s22_s22 = sadd.s32 1, %s831_s22   ;;  %s1212_s17 = sld [smem:[#allocation12_spill]] }
 0x188   : > { %p19_p2 = scmp.ge.s32.totalorder %s22_s22, 6   ;;  %s1213_s14 = sld [smem:[#allocation18_spill]] }
 0x189   : > { %s1214_s7 = sld [smem:[#allocation13_spill]]  ;;  %s1215_s26 = sld [smem:[#allocation19_spill]] }
 0x18a   : > { %s1216_s18 = sld [smem:[#allocation14_spill]]  ;;  %s1217_s19 = sld [smem:[#allocation15_spill]] }
 0x18b   : > { %s1218_s20 = sld [smem:[#allocation16_spill]]  ;;  %s1219_s21 = sld [smem:[#allocation17_spill]] }
 0x18c   : > { %s1220_s12 = smov %s795_s13  ;;  %s1222_s15 = smov %s807_s16 }
 0x18d   : > { %s1221_s13 = smov %s1212_s17  ;;  %21 = sbr.rel (!%p19_p2) target bundleno = 13 (0xd), region = 105 }
 0x18f   : > { %s1223_s16 = smov %s1214_s7  ;;  %s1224_s17 = smov %s1215_s26 }
 0x194   :  { %370 = vsyncpa [#allocation3], 1 }
 0x195   :  { %372 = vsyncpa [#allocation3 + $0x1], 1 }
 0x196   :  { %373 = vsyncpa [#allocation6], 1 }
 0x197   :  { %375 = vsyncpa [#allocation6 + $0x1], 1 }
 0x198   :  { %376 = vsyncpa [#allocation4], 1 }
 0x199   :  { %378 = vsyncpa [#allocation4 + $0x1], 1 }

</bundles_post_ra>
